<compile_context>
chip_gen: v7x
topology: tpu7x:2x2x1
jax: 0.10.0
libtpu: 0.0.40
codegen_flags: <defaults>
</compile_context>

<pallas_src>
from functools import partial

import jax
import jax.numpy as jnp
from jax import lax
from jax.experimental import pallas as pl
from jax.experimental.pallas import tpu as pltpu


def _round_up(v, m):
    return ((v + m - 1) // m) * m


def _cdiv(a, b):
    return -(-a // b)


def _focal_loss_kernel(x_ref, t_ref, out_ref, m_scr, l_scr, acc_scr, *rest,
                       n_classes, alpha_vec, gamma, inv_denom, s_valid, tile,
                       num_tiles, use_stash):
    stash_scr = rest[0] if use_stash else None

    p = pl.program_id(0)          # 0: online-LSE pass, 1: loss pass
    n = pl.program_id(1)
    s = pl.program_id(2)
    last_n = pl.num_programs(1) - 1
    last_s = pl.num_programs(2) - 1

    is_first = (p == 0) & (n == 0) & (s == 0)
    is_pass1_first = (p == 1) & (n == 0) & (s == 0)
    is_last = (p == 1) & (n == last_n) & (s == last_s)

    # Static: does the last spatial tile have out-of-bounds (garbage) lanes?
    needs_mask = (s_valid % tile) != 0

    def lane_valid():
        lane = lax.broadcasted_iota(jnp.int32, (1, tile), 1)
        return (s * tile + lane) < s_valid

    @pl.when(is_first)
    def _init():
        m_scr[...] = jnp.full_like(m_scr, -jnp.inf)
        l_scr[...] = jnp.zeros_like(l_scr)
        acc_scr[...] = jnp.zeros_like(acc_scr)
        out_ref[...] = jnp.zeros_like(out_ref)

    @pl.when(p == 0)
    def _pass_lse():
        # all math in f32 (v5e has no bf16 VPU/EUP); upcast the native tile
        x = x_ref[...].astype(jnp.float32)                       # (C, tile)
        if needs_mask:
            # mask OOB edge lanes before max/exp (garbage may even be NaN)
            x = jnp.where(lane_valid(), x, -1e30)

        # online per-class logsumexp over the sample axis (lanes + grid steps)
        tile_max = jnp.max(x, axis=-1, keepdims=True)            # (C, 1)
        m_new = jnp.maximum(m_scr[...], tile_max)
        scale = jnp.exp(m_scr[...] - m_new)
        tile_sum = jnp.sum(jnp.exp(x - m_new), axis=-1, keepdims=True)
        l_scr[...] = l_scr[...] * scale + tile_sum
        m_scr[...] = m_new

        if use_stash:
            # gather x[target] while the tile is resident, so pass 1 never
            # re-reads x from HBM
            t = t_ref[...].astype(jnp.int32)                     # (1, tile)
            sel = x[0:1, :]
            for c in range(1, n_classes):
                sel = jnp.where(t == c, x[c:c + 1, :], sel)
            row = n * num_tiles + s
            stash_scr[pl.ds(row, 1), :] = sel

    @pl.when(is_pass1_first)
    def _finalize_lse():
        # hoisted: compute lse once; m_scr holds the per-class lse from now on
        m_scr[...] = m_scr[...] + jnp.log(l_scr[...])

    @pl.when(p == 1)
    def _pass_loss():
        t = t_ref[...].astype(jnp.int32)                         # (1, tile)
        lse = m_scr[...]                                         # (C, 1)

        if use_stash:
            row = n * num_tiles + s
            g = stash_scr[pl.ds(row, 1), :]                      # (1, tile) f32
        else:
            # fallback: gather first on the native-dtype tile, upcast only the
            # gathered row (no full (C,tile) f32 intermediate)
            xn = x_ref[...]
            gsel = xn[0:1, :]
            for c in range(1, n_classes):
                gsel = jnp.where(t == c, xn[c:c + 1, :], gsel)
            g = gsel.astype(jnp.float32)

        # gather lse[target] from the tiny (C,1) vector
        lse_t = jnp.broadcast_to(lse[0:1, :], g.shape)
        for c in range(1, n_classes):
            lse_t = jnp.where(t == c, lse[c:c + 1, :], lse_t)

        logpt = g - lse_t
        pt = jnp.exp(logpt)

        # alpha gather (mirrors torch: float alpha -> [alpha, 1-alpha]).
        # NOTE: targets must be valid indices into alpha_vec; out-of-range
        # targets silently use entry 0 (torch would raise).
        if alpha_vec is None:
            at = None
        elif len(alpha_vec) == 2:
            a0, a1 = alpha_vec
            at = jnp.float32(a0) + jnp.float32(a1 - a0) * (t == 1).astype(jnp.float32)
        else:
            at = jnp.full_like(logpt, jnp.float32(alpha_vec[0]))
            for idx in range(1, len(alpha_vec)):
                at = jnp.where(t == idx, jnp.float32(alpha_vec[idx]), at)

        logpt_a = logpt if at is None else logpt * at

        # (1 - pt) ** gamma : unrolled multiply for integer gamma (VALU, no EUP)
        one_minus_pt = 1.0 - pt
        if float(gamma) == int(gamma) and gamma >= 0:
            w = jnp.ones_like(one_minus_pt)
            for _ in range(int(gamma)):
                w = w * one_minus_pt
        else:
            # clamp: exp(logpt) can exceed 1 by an ulp -> pow of negative = NaN
            w = jnp.maximum(one_minus_pt, 0.0) ** jnp.float32(gamma)

        loss = -w * logpt_a
        if needs_mask:
            # select (not multiply): OOB edge lanes may carry garbage/NaN
            loss = jnp.where(lane_valid(), loss, 0.0)
        acc_scr[...] += loss

    @pl.when(is_last)
    def _emit():
        total = jnp.sum(acc_scr[...], keepdims=True)             # (1, 1)
        out_ref[...] = total * jnp.float32(inv_denom)


def focal_loss(x, target, *, gamma=2, alpha=0.25, reduction="mean",
               max_tile_lanes=131072, max_stash_bytes=8 * 1024 * 1024,
               vmem_tile_budget=20 * 1024 * 1024):
    """JAX/Pallas equivalent of FocalLoss(gamma, alpha, reduction).forward(x, target)."""
    if x.ndim > 2:
        N, C = int(x.shape[0]), int(x.shape[1])
        S = 1
        for d in x.shape[2:]:
            S *= int(d)
        x3 = x.reshape(N, C, S)                  # pure reshape — no copy
        tgt = target.reshape(N, 1, S)
    else:
        # TODO(synk): (M, C) corner case — a C-on-lanes kernel variant would
        # avoid this HBM transpose.
        M0, C = int(x.shape[0]), int(x.shape[1])
        N, S = 1, M0
        x3 = x.T.reshape(1, C, S)
        tgt = target.reshape(1, 1, S)

    M = N * S

    # targets travel narrow (4x/2x less target traffic), upcast in-kernel
    t_dtype = jnp.int8 if C <= 127 else jnp.int16
    t3 = tgt.astype(t_dtype)

    # alpha handling (mirrors the torch module)
    if alpha is None:
        alpha_vec = None
    elif isinstance(alpha, (float, int)):
        alpha_vec = (float(alpha), float(1.0 - alpha))   # targets in {0, 1}
    else:
        alpha_vec = tuple(float(a) for a in alpha)

    if reduction == "mean":
        inv_denom = 1.0 / float(M)
    elif reduction == "sum":
        inv_denom = 1.0
    else:
        raise ValueError(f"unsupported reduction: {reduction!r}")

    itemsize = x3.dtype.itemsize
    t_item = t3.dtype.itemsize

    # --- lane-tile sizing from a VMEM budget (biggest lever) -----------------
    # per lane: x double-buffered + t double-buffered + f32 temporaries + acc
    bytes_per_lane = 2 * C * itemsize + 2 * t_item + 16 * C + 8
    tile_cap = (vmem_tile_budget // bytes_per_lane) // 128 * 128
    tile_cap = max(128, min(int(tile_cap), int(max_tile_lanes)))
    if S <= tile_cap:
        tile = S                 # block dim == full array dim: no OOB, no mask
        num_tiles = 1
    else:
        nt = _cdiv(S, tile_cap)
        tile = _round_up(_cdiv(S, nt), 128)   # balanced tiles, tail masked in-kernel
        num_tiles = _cdiv(S, tile)

    # --- VMEM stash of gathered target logits (skip x re-read in pass 1) -----
    stash_rows = N * num_tiles
    stash_phys = _round_up(stash_rows, 8) * _round_up(tile, 128) * 4
    use_stash = stash_phys <= max_stash_bytes

    # explicit VMEM limit so big double-buffered tiles compile on every gen
    est = (2 * C * tile * itemsize + 2 * tile * t_item + 4 * C * tile * 4
           + tile * 4 + (stash_phys if use_stash else 0) + (2 << 20))
    vmem_limit = int(min(max(2 * est, 32 << 20), 56 << 20))

    # phase-dependent index maps: skip DMAs that a pass does not need
    if use_stash:
        x_map = lambda p, n, s: (n * (1 - p), 0, s * (1 - p))   # frozen in pass 1
        t_map = lambda p, n, s: (n, 0, s)                       # needed both passes
    else:
        x_map = lambda p, n, s: (n, 0, s)
        t_map = lambda p, n, s: (n * p, 0, s * p)               # frozen in pass 0

    scratch = [
        pltpu.VMEM((C, 1), jnp.float32),     # running max m / later per-class lse
        pltpu.VMEM((C, 1), jnp.float32),     # running sum-of-exp l
        pltpu.VMEM((1, tile), jnp.float32),  # lane-wide loss accumulator
    ]
    if use_stash:
        scratch.append(pltpu.VMEM((stash_rows, tile), jnp.float32))

    kern = partial(
        _focal_loss_kernel,
        n_classes=C,
        alpha_vec=alpha_vec,
        gamma=gamma,
        inv_denom=inv_denom,
        s_valid=S,
        tile=tile,
        num_tiles=num_tiles,
        use_stash=use_stash,
    )

    x_bytes = N * C * S * itemsize
    t_bytes = N * S * t_item
    cost = pl.CostEstimate(
        flops=int(12 * N * C * num_tiles * tile),
        transcendentals=int(N * num_tiles * tile * (C + 1) + C),
        bytes_accessed=int(x_bytes * (1 if use_stash else 2) + 2 * t_bytes + 4),
    )

    out = pl.pallas_call(
        kern,
        out_shape=jax.ShapeDtypeStruct((1, 1), jnp.float32),
        grid_spec=pltpu.PrefetchScalarGridSpec(
            num_scalar_prefetch=0,
            grid=(2, N, num_tiles),                  # (phase, batch, spatial tile)
            in_specs=[
                pl.BlockSpec((None, C, tile), x_map),   # x
                pl.BlockSpec((None, 1, tile), t_map),   # target
            ],
            out_specs=pl.BlockSpec((1, 1), lambda p, n, s: (0, 0)),
            scratch_shapes=scratch,
        ),
        compiler_params=pltpu.CompilerParams(
            # both passes carry sequential state (online LSE, loss accumulator)
            dimension_semantics=("arbitrary", "arbitrary", "arbitrary"),
            vmem_limit_bytes=vmem_limit,
        ),
        cost_estimate=cost,
    )(x3, t3)
    return out[0, 0]


def _focal_loss_ref(x, target, *, gamma=2, alpha=0.25):
    """Pure-JAX reference mirroring the PyTorch forward exactly."""
    N, C = x.shape[0], x.shape[1]
    x2d = x.reshape(N, C, -1).transpose(0, 2, 1).reshape(-1, C)
    t = target.reshape(-1)
    logpt_full = jax.nn.log_softmax(x2d, axis=0)
    logpt = jnp.take_along_axis(logpt_full, t[:, None], axis=1)[:, 0]
    pt = jnp.exp(logpt)
    alpha_vec = jnp.array([alpha, 1.0 - alpha], jnp.float32)
    at = alpha_vec[t]
    logpt = logpt * at
    loss = -((1.0 - pt) ** gamma) * logpt
    return loss.mean()


if __name__ == "__main__":
    key = jax.random.PRNGKey(0)
    kx, kt, kx2, kt2 = jax.random.split(key, 4)

    # primary shape from the module spec
    N, C, H, W = 2, 4, 16, 16
    x = jax.random.normal(kx, (N, C, H, W), dtype=jnp.float32)
    # alpha tensor has 2 entries ([alpha, 1-alpha]) -> targets live in {0, 1}
    target = jax.random.randint(kt, (N, H, W), 0, 2, dtype=jnp.int32)

    loss = focal_loss(x, target, gamma=2, alpha=0.25, reduction="mean")
    jax.block_until_ready(loss)
    ref = _focal_loss_ref(x, target, gamma=2, alpha=0.25)
    assert jnp.allclose(loss, ref, rtol=1e-4, atol=1e-5), (loss, ref)

    # non-128-multiple spatial size (single exact-width tile, no padding copy)
    H2 = W2 = 40
    x2 = jax.random.normal(kx2, (N, C, H2, W2), dtype=jnp.float32)
    t2 = jax.random.randint(kt2, (N, H2, W2), 0, 2, dtype=jnp.int32)
    loss2 = focal_loss(x2, t2, gamma=2, alpha=0.25, reduction="mean")
    jax.block_until_ready(loss2)
    ref2 = _focal_loss_ref(x2, t2, gamma=2, alpha=0.25)
    assert jnp.allclose(loss2, ref2, rtol=1e-4, atol=1e-5), (loss2, ref2)

    # force multiple lane tiles: exercises the multi-step online LSE, the
    # ragged-tail lane mask, the VMEM stash rows, and the no-stash fallback.
    loss3 = focal_loss(x2, t2, max_tile_lanes=256)
    loss4 = focal_loss(x2, t2, max_tile_lanes=256, max_stash_bytes=0)
    jax.block_until_ready((loss3, loss4))
    assert jnp.allclose(loss3, ref2, rtol=1e-4, atol=1e-5), (loss3, ref2)
    assert jnp.allclose(loss4, ref2, rtol=1e-4, atol=1e-5), (loss4, ref2)

    print("KERNEL_OK")
</pallas_src>

<mosaic_0001>
module attributes {stable_mosaic.version = 11 : i64} {
  func.func @_focal_loss_kernel(%arg0: i32, %arg1: i32, %arg2: i32, %arg3: memref<1x4x256xf32, #tpu.memory_space<vmem>>, %arg4: memref<1x1x256xi8, #tpu.memory_space<vmem>>, %arg5: memref<1x1xf32, #tpu.memory_space<vmem>>, %arg6: memref<4x1xf32, #tpu.memory_space<vmem>>, %arg7: memref<4x1xf32, #tpu.memory_space<vmem>>, %arg8: memref<1x256xf32, #tpu.memory_space<vmem>>, %arg9: memref<2x256xf32, #tpu.memory_space<vmem>>) attributes {dimension_semantics = [#tpu.dimension_semantics<arbitrary>, #tpu.dimension_semantics<arbitrary>, #tpu.dimension_semantics<arbitrary>], iteration_bounds = array<i64: 2, 2, 1>, scalar_prefetch = 0 : i64, scratch_operands = 4 : i64, tpu.core_type = #tpu.core_type<tc>, window_params = [{transform_indices = @transform_0, window_bounds = array<i64: 1, 4, 256>}, {transform_indices = @transform_1, window_bounds = array<i64: 1, 1, 256>}, {pipeline_mode = #tpu.pipeline_mode<synchronous>, transform_indices = @transform_2, window_bounds = array<i64: 1, 1>}]} {
    %c0_i32 = arith.constant 0 : i32
    %0 = arith.cmpi eq, %arg0, %c0_i32 : i32
    %c0_i32_0 = arith.constant 0 : i32
    %1 = arith.cmpi eq, %arg1, %c0_i32_0 : i32
    %2 = arith.andi %0, %1 : i1
    %c0_i32_1 = arith.constant 0 : i32
    %3 = arith.cmpi eq, %arg2, %c0_i32_1 : i32
    %4 = arith.andi %2, %3 : i1
    %c1_i32 = arith.constant 1 : i32
    %5 = arith.cmpi eq, %arg0, %c1_i32 : i32
    %c0_i32_2 = arith.constant 0 : i32
    %6 = arith.cmpi eq, %arg1, %c0_i32_2 : i32
    %7 = arith.andi %5, %6 : i1
    %c0_i32_3 = arith.constant 0 : i32
    %8 = arith.cmpi eq, %arg2, %c0_i32_3 : i32
    %9 = arith.andi %7, %8 : i1
    %c1_i32_4 = arith.constant 1 : i32
    %10 = arith.cmpi eq, %arg0, %c1_i32_4 : i32
    %c1_i32_5 = arith.constant 1 : i32
    %11 = arith.cmpi eq, %arg1, %c1_i32_5 : i32
    %12 = arith.andi %10, %11 : i1
    %c0_i32_6 = arith.constant 0 : i32
    %13 = arith.cmpi eq, %arg2, %c0_i32_6 : i32
    %14 = arith.andi %12, %13 : i1
    %15 = arith.extui %4 : i1 to i32
    %c0_i32_7 = arith.constant 0 : i32
    %16 = arith.cmpi ne, %15, %c0_i32_7 : i32
    scf.if %16 {
      %cst = arith.constant 0xFF800000 : f32
      %27 = vector.broadcast %cst : f32 to vector<4x1xf32>
      %c0 = arith.constant 0 : index
      %c0_14 = arith.constant 0 : index
      %28 = vector.load %arg6[%c0, %c0_14] : memref<4x1xf32, #tpu.memory_space<vmem>>, vector<4x1xf32>
      tpu.vector_store %arg6[%c0, %c0_14], %27 {strides = array<i32>} : memref<4x1xf32, #tpu.memory_space<vmem>>, vector<4x1xf32>,
      %cst_15 = arith.constant 0.000000e+00 : f32
      %29 = vector.broadcast %cst_15 : f32 to vector<4x1xf32>
      %c0_16 = arith.constant 0 : index
      %c0_17 = arith.constant 0 : index
      %30 = vector.load %arg7[%c0_16, %c0_17] : memref<4x1xf32, #tpu.memory_space<vmem>>, vector<4x1xf32>
      tpu.vector_store %arg7[%c0_16, %c0_17], %29 {strides = array<i32>} : memref<4x1xf32, #tpu.memory_space<vmem>>, vector<4x1xf32>,
      %cst_18 = arith.constant 0.000000e+00 : f32
      %31 = vector.broadcast %cst_18 : f32 to vector<1x256xf32>
      %c0_19 = arith.constant 0 : index
      %c0_20 = arith.constant 0 : index
      %32 = vector.load %arg8[%c0_19, %c0_20] : memref<1x256xf32, #tpu.memory_space<vmem>>, vector<1x256xf32>
      tpu.vector_store %arg8[%c0_19, %c0_20], %31 {strides = array<i32>} : memref<1x256xf32, #tpu.memory_space<vmem>>, vector<1x256xf32>,
      %cst_21 = arith.constant 0.000000e+00 : f32
      %33 = vector.broadcast %cst_21 : f32 to vector<1x1xf32>
      %c0_22 = arith.constant 0 : index
      %c0_23 = arith.constant 0 : index
      %34 = vector.load %arg5[%c0_22, %c0_23] : memref<1x1xf32, #tpu.memory_space<vmem>>, vector<1x1xf32>
      tpu.vector_store %arg5[%c0_22, %c0_23], %33 {strides = array<i32>} : memref<1x1xf32, #tpu.memory_space<vmem>>, vector<1x1xf32>,
    } else {
    }
    %c0_i32_8 = arith.constant 0 : i32
    %17 = arith.cmpi eq, %arg0, %c0_i32_8 : i32
    %18 = arith.extui %17 : i1 to i32
    %c0_i32_9 = arith.constant 0 : i32
    %19 = arith.cmpi ne, %18, %c0_i32_9 : i32
    scf.if %19 {
      %c0 = arith.constant 0 : index
      %c0_14 = arith.constant 0 : index
      %c0_15 = arith.constant 0 : index
      %27 = vector.load %arg3[%c0, %c0_14, %c0_15] : memref<1x4x256xf32, #tpu.memory_space<vmem>>, vector<1x4x256xf32>
      %28 = vector.shape_cast %27 : vector<1x4x256xf32> to vector<4x256xf32>
      %cst = arith.constant dense<0xFF800000> : vector<4xf32>
      %29 = vector.multi_reduction <maximumf>, %28, %cst [1] : vector<4x256xf32> to vector<4xf32>
      %30 = vector.shape_cast %29 : vector<4xf32> to vector<4x1xf32>
      %c0_16 = arith.constant 0 : index
      %c0_17 = arith.constant 0 : index
      %31 = vector.load %arg6[%c0_16, %c0_17] : memref<4x1xf32, #tpu.memory_space<vmem>>, vector<4x1xf32>
      %32 = arith.maximumf %31, %30 : vector<4x1xf32>
      %c0_18 = arith.constant 0 : index
      %c0_19 = arith.constant 0 : index
      %33 = vector.load %arg6[%c0_18, %c0_19] : memref<4x1xf32, #tpu.memory_space<vmem>>, vector<4x1xf32>
      %34 = arith.subf %33, %32 : vector<4x1xf32>
      %35 = math.exp %34 : vector<4x1xf32>
      %36 = vector.broadcast %32 : vector<4x1xf32> to vector<4x256xf32>
      %37 = arith.subf %28, %36 : vector<4x256xf32>
      %38 = math.exp %37 : vector<4x256xf32>
      %cst_20 = arith.constant dense<0.000000e+00> : vector<4xf32>
      %39 = vector.multi_reduction <add>, %38, %cst_20 [1] : vector<4x256xf32> to vector<4xf32>
      %40 = vector.shape_cast %39 : vector<4xf32> to vector<4x1xf32>
      %c0_21 = arith.constant 0 : index
      %c0_22 = arith.constant 0 : index
      %41 = vector.load %arg7[%c0_21, %c0_22] : memref<4x1xf32, #tpu.memory_space<vmem>>, vector<4x1xf32>
      %42 = arith.mulf %41, %35 : vector<4x1xf32>
      %43 = arith.addf %42, %40 : vector<4x1xf32>
      %c0_23 = arith.constant 0 : index
      %c0_24 = arith.constant 0 : index
      %44 = vector.load %arg7[%c0_23, %c0_24] : memref<4x1xf32, #tpu.memory_space<vmem>>, vector<4x1xf32>
      tpu.vector_store %arg7[%c0_23, %c0_24], %43 {strides = array<i32>} : memref<4x1xf32, #tpu.memory_space<vmem>>, vector<4x1xf32>,
      %c0_25 = arith.constant 0 : index
      %c0_26 = arith.constant 0 : index
      %45 = vector.load %arg6[%c0_25, %c0_26] : memref<4x1xf32, #tpu.memory_space<vmem>>, vector<4x1xf32>
      tpu.vector_store %arg6[%c0_25, %c0_26], %32 {strides = array<i32>} : memref<4x1xf32, #tpu.memory_space<vmem>>, vector<4x1xf32>,
      %c0_27 = arith.constant 0 : index
      %c0_28 = arith.constant 0 : index
      %c0_29 = arith.constant 0 : index
      %46 = vector.load %arg4[%c0_27, %c0_28, %c0_29] : memref<1x1x256xi8, #tpu.memory_space<vmem>>, vector<1x1x256xi8>
      %47 = vector.shape_cast %46 : vector<1x1x256xi8> to vector<1x256xi8>
      %48 = arith.extsi %47 : vector<1x256xi8> to vector<1x256xi32>
      %49 = vector.extract_strided_slice %28 {offsets = [0, 0], sizes = [1, 256], strides = [1, 1]} : vector<4x256xf32> to vector<1x256xf32>
      %c1_i32_30 = arith.constant 1 : i32
      %50 = vector.broadcast %c1_i32_30 : i32 to vector<1x256xi32>
      %51 = arith.cmpi eq, %48, %50 : vector<1x256xi32>
      %52 = vector.extract_strided_slice %28 {offsets = [1, 0], sizes = [1, 256], strides = [1, 1]} : vector<4x256xf32> to vector<1x256xf32>
      %53 = arith.select %51, %52, %49 : vector<1x256xi1>, vector<1x256xf32>
      %c2_i32 = arith.constant 2 : i32
      %54 = vector.broadcast %c2_i32 : i32 to vector<1x256xi32>
      %55 = arith.cmpi eq, %48, %54 : vector<1x256xi32>
      %56 = vector.extract_strided_slice %28 {offsets = [2, 0], sizes = [1, 256], strides = [1, 1]} : vector<4x256xf32> to vector<1x256xf32>
      %57 = arith.select %55, %56, %53 : vector<1x256xi1>, vector<1x256xf32>
      %c3_i32 = arith.constant 3 : i32
      %58 = vector.broadcast %c3_i32 : i32 to vector<1x256xi32>
      %59 = arith.cmpi eq, %48, %58 : vector<1x256xi32>
      %60 = vector.extract_strided_slice %28 {offsets = [3, 0], sizes = [1, 256], strides = [1, 1]} : vector<4x256xf32> to vector<1x256xf32>
      %61 = arith.select %59, %60, %57 : vector<1x256xi1>, vector<1x256xf32>
      %c1_i32_31 = arith.constant 1 : i32
      %62 = arith.muli %arg1, %c1_i32_31 : i32
      %63 = arith.addi %62, %arg2 : i32
      %64 = arith.index_cast %63 : i32 to index
      %c0_32 = arith.constant 0 : index
      %65 = vector.load %arg9[%64, %c0_32] : memref<2x256xf32, #tpu.memory_space<vmem>>, vector<1x256xf32>
      tpu.vector_store %arg9[%64, %c0_32], %61 {strides = array<i32>} : memref<2x256xf32, #tpu.memory_space<vmem>>, vector<1x256xf32>,
    } else {
    }
    %20 = arith.extui %9 : i1 to i32
    %c0_i32_10 = arith.constant 0 : i32
    %21 = arith.cmpi ne, %20, %c0_i32_10 : i32
    scf.if %21 {
      %c0 = arith.constant 0 : index
      %c0_14 = arith.constant 0 : index
      %27 = vector.load %arg6[%c0, %c0_14] : memref<4x1xf32, #tpu.memory_space<vmem>>, vector<4x1xf32>
      %c0_15 = arith.constant 0 : index
      %c0_16 = arith.constant 0 : index
      %28 = vector.load %arg7[%c0_15, %c0_16] : memref<4x1xf32, #tpu.memory_space<vmem>>, vector<4x1xf32>
      %29 = math.log %28 : vector<4x1xf32>
      %30 = arith.addf %27, %29 : vector<4x1xf32>
      %c0_17 = arith.constant 0 : index
      %c0_18 = arith.constant 0 : index
      %31 = vector.load %arg6[%c0_17, %c0_18] : memref<4x1xf32, #tpu.memory_space<vmem>>, vector<4x1xf32>
      tpu.vector_store %arg6[%c0_17, %c0_18], %30 {strides = array<i32>} : memref<4x1xf32, #tpu.memory_space<vmem>>, vector<4x1xf32>,
    } else {
    }
    %c1_i32_11 = arith.constant 1 : i32
    %22 = arith.cmpi eq, %arg0, %c1_i32_11 : i32
    %23 = arith.extui %22 : i1 to i32
    %c0_i32_12 = arith.constant 0 : i32
    %24 = arith.cmpi ne, %23, %c0_i32_12 : i32
    scf.if %24 {
      %c0 = arith.constant 0 : index
      %c0_14 = arith.constant 0 : index
      %c0_15 = arith.constant 0 : index
      %27 = vector.load %arg4[%c0, %c0_14, %c0_15] : memref<1x1x256xi8, #tpu.memory_space<vmem>>, vector<1x1x256xi8>
      %28 = vector.shape_cast %27 : vector<1x1x256xi8> to vector<1x256xi8>
      %29 = arith.extsi %28 : vector<1x256xi8> to vector<1x256xi32>
      %c0_16 = arith.constant 0 : index
      %c0_17 = arith.constant 0 : index
      %30 = vector.load %arg6[%c0_16, %c0_17] : memref<4x1xf32, #tpu.memory_space<vmem>>, vector<4x1xf32>
      %c1_i32_18 = arith.constant 1 : i32
      %31 = arith.muli %arg1, %c1_i32_18 : i32
      %32 = arith.addi %31, %arg2 : i32
      %33 = arith.index_cast %32 : i32 to index
      %c0_19 = arith.constant 0 : index
      %34 = vector.load %arg9[%33, %c0_19] : memref<2x256xf32, #tpu.memory_space<vmem>>, vector<1x256xf32>
      %35 = vector.extract_strided_slice %30 {offsets = [0, 0], sizes = [1, 1], strides = [1, 1]} : vector<4x1xf32> to vector<1x1xf32>
      %36 = vector.shape_cast %35 : vector<1x1xf32> to vector<1x1xf32>
      %37 = vector.broadcast %36 : vector<1x1xf32> to vector<1x256xf32>
      %c1_i32_20 = arith.constant 1 : i32
      %38 = vector.broadcast %c1_i32_20 : i32 to vector<1x256xi32>
      %39 = arith.cmpi eq, %29, %38 : vector<1x256xi32>
      %40 = vector.extract_strided_slice %30 {offsets = [1, 0], sizes = [1, 1], strides = [1, 1]} : vector<4x1xf32> to vector<1x1xf32>
      %41 = vector.shape_cast %40 : vector<1x1xf32> to vector<1x1xf32>
      %42 = vector.broadcast %41 : vector<1x1xf32> to vector<1x256xf32>
      %43 = arith.select %39, %42, %37 : vector<1x256xi1>, vector<1x256xf32>
      %c2_i32 = arith.constant 2 : i32
      %44 = vector.broadcast %c2_i32 : i32 to vector<1x256xi32>
      %45 = arith.cmpi eq, %29, %44 : vector<1x256xi32>
      %46 = vector.extract_strided_slice %30 {offsets = [2, 0], sizes = [1, 1], strides = [1, 1]} : vector<4x1xf32> to vector<1x1xf32>
      %47 = vector.shape_cast %46 : vector<1x1xf32> to vector<1x1xf32>
      %48 = vector.broadcast %47 : vector<1x1xf32> to vector<1x256xf32>
      %49 = arith.select %45, %48, %43 : vector<1x256xi1>, vector<1x256xf32>
      %c3_i32 = arith.constant 3 : i32
      %50 = vector.broadcast %c3_i32 : i32 to vector<1x256xi32>
      %51 = arith.cmpi eq, %29, %50 : vector<1x256xi32>
      %52 = vector.extract_strided_slice %30 {offsets = [3, 0], sizes = [1, 1], strides = [1, 1]} : vector<4x1xf32> to vector<1x1xf32>
      %53 = vector.shape_cast %52 : vector<1x1xf32> to vector<1x1xf32>
      %54 = vector.broadcast %53 : vector<1x1xf32> to vector<1x256xf32>
      %55 = arith.select %51, %54, %49 : vector<1x256xi1>, vector<1x256xf32>
      %56 = arith.subf %34, %55 : vector<1x256xf32>
      %57 = math.exp %56 : vector<1x256xf32>
      %c1_i32_21 = arith.constant 1 : i32
      %58 = vector.broadcast %c1_i32_21 : i32 to vector<1x256xi32>
      %59 = arith.cmpi eq, %29, %58 : vector<1x256xi32>
      %60 = arith.extui %59 : vector<1x256xi1> to vector<1x256xi32>
      %61 = arith.sitofp %60 : vector<1x256xi32> to vector<1x256xf32>
      %cst = arith.constant 5.000000e-01 : f32
      %62 = vector.broadcast %cst : f32 to vector<1x256xf32>
      %63 = arith.mulf %62, %61 : vector<1x256xf32>
      %cst_22 = arith.constant 2.500000e-01 : f32
      %64 = vector.broadcast %cst_22 : f32 to vector<1x256xf32>
      %65 = arith.addf %64, %63 : vector<1x256xf32>
      %66 = arith.mulf %56, %65 : vector<1x256xf32>
      %cst_23 = arith.constant 1.000000e+00 : f32
      %67 = vector.broadcast %cst_23 : f32 to vector<1x256xf32>
      %68 = arith.subf %67, %57 : vector<1x256xf32>
      %cst_24 = arith.constant 1.000000e+00 : f32
      %69 = vector.broadcast %cst_24 : f32 to vector<1x256xf32>
      %70 = arith.mulf %69, %68 : vector<1x256xf32>
      %71 = arith.mulf %70, %68 : vector<1x256xf32>
      %cst_25 = arith.constant 0.000000e+00 : f32
      %72 = vector.broadcast %cst_25 : f32 to vector<1x256xf32>
      %73 = arith.subf %72, %71 : vector<1x256xf32>
      %74 = arith.mulf %73, %66 : vector<1x256xf32>
      %c0_26 = arith.constant 0 : index
      %c0_27 = arith.constant 0 : index
      %75 = vector.load %arg8[%c0_26, %c0_27] : memref<1x256xf32, #tpu.memory_space<vmem>>, vector<1x256xf32>
      %76 = arith.addf %75, %74 : vector<1x256xf32>
      %c0_28 = arith.constant 0 : index
      %c0_29 = arith.constant 0 : index
      %77 = vector.load %arg8[%c0_28, %c0_29] : memref<1x256xf32, #tpu.memory_space<vmem>>, vector<1x256xf32>
      tpu.vector_store %arg8[%c0_28, %c0_29], %76 {strides = array<i32>} : memref<1x256xf32, #tpu.memory_space<vmem>>, vector<1x256xf32>,
    } else {
    }
    %25 = arith.extui %14 : i1 to i32
    %c0_i32_13 = arith.constant 0 : i32
    %26 = arith.cmpi ne, %25, %c0_i32_13 : i32
    scf.if %26 {
      %c0 = arith.constant 0 : index
      %c0_14 = arith.constant 0 : index
      %27 = vector.load %arg8[%c0, %c0_14] : memref<1x256xf32, #tpu.memory_space<vmem>>, vector<1x256xf32>
      %28 = vector.shape_cast %27 : vector<1x256xf32> to vector<1x1x256xf32>
      %cst = arith.constant dense<0.000000e+00> : vector<1xf32>
      %29 = vector.multi_reduction <add>, %28, %cst [1, 2] : vector<1x1x256xf32> to vector<1xf32>
      %30 = vector.shape_cast %29 : vector<1xf32> to vector<1x1x1xf32>
      %31 = vector.extract %30[0, 0, 0] : f32 from vector<1x1x1xf32>
      %32 = vector.broadcast %31 : f32 to vector<1x1xf32>
      %cst_15 = arith.constant 0.001953125 : f32
      %33 = vector.broadcast %cst_15 : f32 to vector<1x1xf32>
      %34 = arith.mulf %32, %33 : vector<1x1xf32>
      %c0_16 = arith.constant 0 : index
      %c0_17 = arith.constant 0 : index
      %35 = vector.load %arg5[%c0_16, %c0_17] : memref<1x1xf32, #tpu.memory_space<vmem>>, vector<1x1xf32>
      tpu.vector_store %arg5[%c0_16, %c0_17], %34 {strides = array<i32>} : memref<1x1xf32, #tpu.memory_space<vmem>>, vector<1x1xf32>,
    } else {
    }
    return
  }
  func.func @transform_0(%arg0: i32, %arg1: i32, %arg2: i32) -> (i32, i32, i32) {
    %c1_i32 = arith.constant 1 : i32
    %0 = arith.subi %c1_i32, %arg0 : i32
    %1 = arith.muli %arg1, %0 : i32
    %c1_i32_0 = arith.constant 1 : i32
    %2 = arith.subi %c1_i32_0, %arg0 : i32
    %3 = arith.muli %arg2, %2 : i32
    %c0_i32 = arith.constant 0 : i32
    %c0_i32_1 = arith.constant 0 : i32
    return %1, %c0_i32, %3 : i32, i32, i32
  }
  func.func @transform_1(%arg0: i32, %arg1: i32, %arg2: i32) -> (i32, i32, i32) {
    %c0_i32 = arith.constant 0 : i32
    %c0_i32_0 = arith.constant 0 : i32
    return %arg1, %c0_i32, %arg2 : i32, i32, i32
  }
  func.func @transform_2(%arg0: i32, %arg1: i32, %arg2: i32) -> (i32, i32) {
    %c0_i32 = arith.constant 0 : i32
    %c0_i32_0 = arith.constant 0 : i32
    %c0_i32_1 = arith.constant 0 : i32
    return %c0_i32, %c0_i32_0 : i32, i32
  }
}

</mosaic_0001>

<bundles_post_ra>
// kernel: tpu_custom_call.1
= control target key start
LH: loop header
LB: loop body
LE: loop exit
PB: predicated region body
PF: predicated region fallthrough
CT: control target
= control target key end

     0   :  { %7 = vsyncpa [#allocation7], 0  ;;  %s1069_s0 = inlined_call_operand.hbm [shape: f32[2,4,256], index: 0, kind: input, shape index: {}]   ;;  %s1070_s1 = inlined_call_operand.vmem [shape: s8[2,1,256], index: 1, kind: input, shape index: {}]   ;;  %s1071_s2 = inlined_call_operand.hbm [shape: f32[1,1], index: 2, kind: output, shape index: {}]  }
   0x1   :  { %9 = vsyncpa [#allocation7 + $0x1], 0 }
   0x2   :  { %10 = vsyncpa [#allocation8], 0  ;;  %s856_s9 = smov 0   ;;  %s858_s10 = smov 0  }
   0x3   :  { %s860_s11 = smov 0   ;;  %s862_s12 = smov 0  }
   0x4   :  { %s864_s13 = smov 0   ;;  %s866_s14 = smov 0  }
   0x5   :  { %s868_s15 = smov 0   ;;  %s870_s16 = smov 0  }
   0x6 LB: > { %s570_s17 = sadd.s32 4294967295, %s828_s16   ;;  %s31_s18 = sadd.s32 1, %s820_s14  ;;  %s828_s16 = sphi %s870_s16, %s16_s16   ;;  %s824_s15 = sphi %s868_s15, %s1086_s15   ;;  %s820_s14 = sphi %s866_s14, %s1085_s14   ;;  %s816_s13 = sphi %s864_s13, %s1084_s13   ;;  %s812_s12 = sphi %s862_s12, %s1083_s12   ;;  %s808_s11 = sphi %s860_s11, %s1082_s11   ;;  %s804_s10 = sphi %s858_s10, %s1081_s10   ;;  %s800_s9 = sphi %s856_s9, %s1080_s9  }
   0x7   : > { %p33_p0 = scmp.ge.s32.totalorder %s31_s18, 2  ;;  %s35_s19 = sadd.s32 1, %s824_s15 }
   0x8   : > { %s39_s20 = ssub.s32 1, %s824_s15  ;;  %s50_s21 = sadd.s32 1, %s808_s11 }
   0x9   : > { %s1088_s18 = smov (%p33_p0, %s31_s18), 0  ;;  %s1090_s19 = smov (!%p33_p0, %s35_s19), %s824_s15 }
   0xa   : > { %s40_s22 = smul.u32 %s820_s14, %s39_s20  ;;  %p57_p1 = scmp.ne.s32.totalorder %s808_s11, %s804_s10 }
   0xb   : > { %p37_p2 = scmp.ge.s32.totalorder %s1090_s19, 2  ;;  %p58_p3 = scmp.eq.s32.totalorder %s828_s16, 0 }
   0xc   : > { %p63_p4 = scmp.ne.s32.totalorder %s804_s10, %s800_s9  ;;  %p64_p5 = scmp.eq.s32.totalorder %s570_s17, 0 }
   0xd   : > { %s1092_s19 = smov (%p37_p2, %s1090_s19), 0  ;;  %p911_p6 = por %p58_p3, %p57_p1 }
   0xe   : > { %p915_p7 = por %p64_p5, %p63_p4  ;;  %s42_s25 = ssub.s32 1, %s1092_s19 }
   0xf   : > { %s43_s26 = smul.u32 %s42_s25, %s1088_s18  ;;  %p614_p8 = scmp.lt.s32.totalorder %s828_s16, 4 }
  0x10   : > { %s136_s27 = sand.u32 1, %s808_s11   ;;  %s599_s28 = sshll.u32 %s40_s22, 7 }
  0x11   : > { %s45_s29 = ssub.s32 %s40_s22, %s43_s26  ;;  %s573_s30 = sshll.u32 %s136_s27, 3 }
  0x12   : > { %p48_p9 = scmp.eq.s32.totalorder %s45_s29, 0  ;;  %s926_s5 = scalar_lea.hbm %s1069_s0, %s599_s28 }
  0x13   : > { %s140_s7 = scalar_lea.vmem [#allocation6], %s573_s30  ;;  %p933_p10 = pnand %p614_p8, %p911_p6 }
  0x14   : > { %s929_s6 = scalar_select %p48_p9, %s808_s11, %s50_s21  }
  0x15   : > { %s153_s8 = sshll.u32 %s140_s7, 4  ;;  %s137_s20 = scalar_lea.sflag [#allocation7], %s136_s27  ;;  %s937_s8 = int_to_ptr.vmem [resolvable:$true] %s153_s8 }
  0x16   : > { %s702_s22 = scalar_lea.hbm %s926_s5, 128  ;;  %p704_p0 = pneg %p933_p10 }
  0x17   : > { %p703_p13 = scmp.ne.s32.totalorder %s926_s5, %s702_s22  ;;  %s707_s25 = scalar_lea.hbm %s1069_s0, 256 }
  0x18   : > { %p708_p3 = scmp.lt.u32.totalorder %s926_s5, %s1069_s0  ;;  %p709_p4 = scmp.lt.u32.totalorder %s707_s25, %s702_s22 }
  0x19   : > { %p705_p1 = pnand %p704_p0, %p703_p13  ;;  %p711_p6 = scmp.lt.u32.totalorder %s702_s22, %s926_s5 }
  0x1a   : > { %p710_p5 = por %p709_p4, %p708_p3 }
  0x1b   : > { %p706_p2 = pneg %p705_p1 }
  0x1c   : > { %p712_p8 = por %p711_p6, %p710_p5 }
  0x1e   : > { %p713_p9 = pnand %p712_p8, %p706_p2 }
  0x20   : > { %716 = shalt.err (!%p713_p9)
}
  0x21   : > { %s717_s27 = scalar_lea.vmem %s937_s8, 128  ;;  %s830_s29 = smov [#allocation6]  }
  0x22   : > { %p718_p13 = scmp.ne.s32.totalorder %s937_s8, %s717_s27  ;;  %s722_s30 = sshll.u32 %s830_s29, 4  ;;  %s723_s30 = int_to_ptr.vmem [resolvable:$false] %s722_s30 }
  0x23   : > { %s724_s3 = scalar_lea.vmem %s723_s30, 256  ;;  %p725_p12 = scmp.lt.s32.totalorder %s937_s8, %s723_s30 }
  0x24   : > { %p720_p1 = pnand %p718_p13, %p704_p0  ;;  %p726_p3 = scmp.lt.s32.totalorder %s724_s3, %s717_s27 }
  0x26   : > { %p721_p11 = pneg %p720_p1  ;;  %p727_p4 = por %p726_p3, %p725_p12 }
  0x28   : > { %p728_p5 = pnand %p727_p4, %p721_p11 }
  0x2a   : > { %731 = shalt.err (!%p728_p5)
}
  0x2b   : > { %613 = dma.hbm_to_vmem [thread:$0]  (!%p933_p10), %s926_s5, 128, %s937_s8, %s137_s20  }
  0x2c   : > { %p1075_p2 = scmp.lt.s32.totalorder %s828_s16, 5  ;;  %p1076_p6 = scmp.ge.s32.totalorder %s828_s16, 1 }
  0x2e   : > { %p171_p0 = pnand %p1076_p6, %p1075_p2 }
  0x2f   : > { %s176_s4 = sand.u32 (!%p171_p0), 1, %s804_s10  }
  0x30   : > { %174 = sbr.rel (%p171_p0) target bundleno = 954 (0x3ba), region = 28  ;;  %s971_s7 = sshll.u32 (!%p171_p0), %s176_s4, 3 }
  0x31   : > { %s177_s22 = scalar_lea.sflag (!%p171_p0), [#allocation7], %s176_s4  ;;  %s180_s21 = scalar_lea.vmem (!%p171_p0), [#allocation6], %s971_s7 }
  0x37   : > { %791 = dma.done.wait (%p915_p7), %s177_s22, 128  }
  0x38   : > { %793 = vsyncadd (%p915_p7), %s177_s22, 4294967168  ;;  %p209_p10 = scmp.lt.s32.totalorder %s812_s12, 1  ;;  %p217_p11 = scmp.eq.s32.totalorder %s816_s13, 0 }
  0x39   : > { %p218_p12 = scmp.eq.s32.totalorder %s812_s12, 0  ;;  %p224_p8 = scmp.eq.s32.totalorder %s816_s13, 1 }
  0x3a   : > { %s210_s5 = scalar_select %p209_p10, %s812_s12, 1 }
  0x3b   : > { %p219_p9 = pnand %p218_p12, %p217_p11  ;;  %p983_p13 = pnand %p224_p8, %p218_p12 }
  0x3c   : > { %s578_s9 = sshll.u32 %s210_s5, 1  ;;  %p229_p1 = scmp.eq.s32.totalorder %s812_s12, 1  ;;  %vm236_vm0 = vcmask (!%p219_p9), 3072   ;;  %v239_v0 = vlaneseq (!%p219_p9)  ;;  %v831_v1 = vmov (!%p219_p9), -inf   ;;  %v832_v2 = vmov (!%p219_p9), 0.0  }
  0x3d   : > { %s991_s23 = scalar_lea.vmem %s1070_s1, %s578_s9  ;;  %235 = sbr.rel (%p219_p9) target bundleno = 68 (0x44), region = 36  ;;  %237 = vst.msk [vmem:[#allocation2] sm:$0xf] (!%p219_p9), %vm236_vm0, %v831_v1  ;;  %238 = vst.msk [vmem:[#allocation3] sm:$0xf] (!%p219_p9), %vm236_vm0, %v832_v2  ;;  %vm244_vm1 = vcmask (!%p219_p9), 0  }
  0x3e   : > { %p993_p7 = pnand %p229_p1, %p224_p8  ;;  %vm241_vm2 = vcmp.lt.s32.totalorder (!%p219_p9), %v239_v0, 256  ;;  %245 = vst.msk [vmem:[#allocation9] sm:$0x1] (!%p219_p9), %vm244_vm1, %v832_v2 }
  0x3f   : > { %243 = vst.msk [vmem:[#allocation4] sm:$0x3] (!%p219_p9), %vm241_vm2, %v832_v2 }
  0x44 PF: > { %p582_p3 = scmp.ne.s32.totalorder %s816_s13, 0 }
  0x45   : > { %v249_v3 = vld [vmem:[%s180_s21] sm:$0xff] (!%p582_p3)  ;;  %vm253_vm3 = vcmask (!%p582_p3), 1043456   ;;  %v833_v8 = vmov (!%p582_p3), 0   ;;  %v271_v9 = vlaneseq (!%p582_p3)  ;;  %v293_v10 = vld [vmem:[%s991_s23] sm:$0x3] (!%p582_p3)  ;;  %s331_s26 = sshra.s32 (!%p582_p3), %s812_s12, 1 }
  0x46   : > { %248 = sbr.rel (%p582_p3) target bundleno = 514 (0x202), region = 40  ;;  %v251_v4 = vcombine.high (!%p582_p3), %v249_v3, %v249_v3  ;;  %v254_v5 = vsel (!%p582_p3), %vm253_vm3, %v249_v3, -inf  ;;  %691 = vset.pattern.permute.xlu0 (!%p582_p3), %v833_v8  ;;  %v583_v11 = vrot.slane (!%p582_p3), %v249_v3, 9  ;;  %v294_v12 = vunpack.c.0.s8 (!%p582_p3), %v293_v10  ;;  %s334_s28 = sand.u32 (!%p582_p3), 1, %s812_s12  ;;  %v259_v25 = vld [vmem:[#allocation2] sm:$0xf] (!%p582_p3) }
  0x47   : > { %v584_v13 = vrot.slane (!%p582_p3), %v249_v3, 10  ;;  %v585_v14 = vrot.slane (!%p582_p3), %v249_v3, 11  ;;  %v834_v15 = vmov (!%p582_p3), 1966171168   ;;  %s600_s27 = sshll.u32 (!%p582_p3), %s331_s26, 2  ;;  %v272_v17 = vshrl.u32 (!%p582_p3), %v271_v9, 7 }
  0x48   : > { %v255_v6 = vsel (!%p582_p3), %vm253_vm3, %v251_v4, -inf  ;;  %v313_v16 = vunpack.c.l.s4 (!%p582_p3), %v834_v15  ;;  %vm295_vm4 = vcmp.eq.s32.totalorder (!%p582_p3), %v294_v12, 1  ;;  %vm300_vm5 = vcmp.eq.s32.totalorder (!%p582_p3), %v294_v12, 2  ;;  %s337_s29 = sadd.s32 (!%p582_p3), %s600_s27, %s334_s28  ;;  %v287_v44 = vld [vmem:[#allocation3] sm:$0xf] (!%p582_p3) }
  0x49   : > { %v256_v7 = vmax.f32 (!%p582_p3), %v254_v5, %v255_v6  ;;  %vm305_vm6 = vcmp.eq.s32.totalorder (!%p582_p3), %v294_v12, 3  ;;  %v299_v18 = vsel (!%p582_p3), %vm295_vm4, %v583_v11, %v249_v3  ;;  %vm329_vm7 = vcmp.lt.s32.totalorder (!%p582_p3), %v271_v9, 256  ;;  %s338_s30 = scalar_lea.vmem (!%p582_p3), [#allocation5], %s337_s29 }
  0x4a   : > { %v314_v19 = vunpack.c.0.s8 (!%p582_p3), %v313_v16  ;;  %v304_v20 = vsel (!%p582_p3), %vm300_vm5, %v584_v13, %v299_v18  ;;  %vm290_vm8 = vcmask (!%p582_p3), 3072   ;;  %v835_v29 = vmov (!%p582_p3), 839922192  }
  0x4b   : > { %257 = vmax.xlane.f32.xlu0 (!%p582_p3), %v256_v7  ;;  %v309_v21 = vsel (!%p582_p3), %vm305_vm6, %v585_v14, %v304_v20  ;;  %v269_v30 = vunpack.c.l.s4 (!%p582_p3), %v835_v29 }
  0x4c   : > { %v317_v22 = vsub.s32 (!%p582_p3), %v314_v19, %v272_v17 }
  0x4d   : > { %v270_v31 = vunpack.c.0.s8 %v269_v30 }
  0x4e   : > { %v318_v23 = vrot.slane %v309_v21, %v317_v22 }
  0x4f   : > { %v273_v32 = vsub.s32 %v270_v31, %v272_v17 }
  0x50   : > { %v325_v24 = vrot.slane %v318_v23, %v317_v22 }
  0x52   : > { %339 = vst.msk [vmem:[%s338_s30] ss:$2 sm:$0x3] %vm329_vm7, %v325_v24 }
  0xd8   : > { %v258_v26 = vpop.xlane.xlu0 %257 }
  0xd9   : > { %v260_v27 = vmax.f32 %v259_v25, %v258_v26 }
  0xdb   : > { %v261_v28 = vsub.f32 %v259_v25, %v260_v27  ;;  %292 = vst.msk [vmem:[#allocation2] sm:$0xf] %vm290_vm8, %v260_v27  ;;  %266 = vperm.xlu0 %691, %v260_v27  }
  0xdd   : > { %v262_v42 = vmul.f32 1.442695, %v261_v28 }
 0x15a   : > { %v267_v33 = vpop.permute.xlu0 %266 }
 0x15b   : > { %v274_v34 = vrot.slane %v267_v33, %v273_v32 }
 0x15d   : > { %v276_v35 = vsub.f32 %v249_v3, %v274_v34 }
 0x15f   : > { %v277_v36 = vmul.f32 1.442695, %v276_v35 }
 0x161   : > { %693 = vpow2.f32 %v277_v36 }
 0x162   : > { %695 = vpow2.f32 %v262_v42 }
 0x16b   : > { %v694_v37 = vpop.eup %693 }
 0x16c   : > { %v280_v38 = vcombine.high %v694_v37, %v694_v37  ;;  %v282_v39 = vsel %vm253_vm3, %v694_v37, 0.0  ;;  %v696_v43 = vpop.eup %695 }
 0x16d   : > { %v288_v45 = vmul.f32 %v696_v43, %v287_v44 }
 0x16e   : > { %v283_v40 = vsel %vm253_vm3, %v280_v38, 0.0 }
 0x16f   : > { %v284_v41 = vadd.f32 %v283_v40, %v282_v39 }
 0x171   : > { %285 = vadd.xlane.f32.xlu1 %v284_v41 }
 0x1fe   : > { %v286_v46 = vpop.xlane.xlu1 %285 }
 0x1ff   : > { %v289_v47 = vadd.f32 %v288_v45, %v286_v46 }
 0x201   : > { %291 = vst.msk [vmem:[#allocation3] sm:$0xf] %vm290_vm8, %v289_v47 }
 0x202 PF: > { %341 = sbr.rel (%p983_p13) target bundleno = 537 (0x219), region = 44  ;;  %v342_v50 = vld [vmem:[#allocation2] sm:$0xf] (!%p983_p13)  ;;  %vm347_vm9 = vcmask (!%p983_p13), 3072  }
 0x208   : > { %v343_v48 = vld [vmem:[#allocation3] sm:$0xf] (!%p983_p13) }
 0x209   : > { %697 = vlog2.f32 %v343_v48 }
 0x213   : > { %v698_v49 = vpop.eup %697 }
 0x214   : > { %v345_v51 = vmul.f32 0.6931472, %v698_v49 }
 0x216   : > { %v346_v52 = vadd.f32 %v345_v51, %v342_v50 }
 0x218   : > { %348 = vst.msk [vmem:[#allocation2] sm:$0xf] %vm347_vm9, %v346_v52 }
 0x219 PF: > { %p588_p4 = scmp.ne.s32.totalorder %s816_s13, 1 }
 0x21a   : > { %v836_v54 = vmov (!%p588_p4), 0   ;;  %v837_v55 = vmov (!%p588_p4), 839922192   ;;  %v373_v57 = vlaneseq (!%p588_p4)  ;;  %v352_v60 = vld [vmem:[%s991_s23] sm:$0x3] (!%p588_p4)  ;;  %s356_s3 = sshra.s32 (!%p588_p4), %s812_s12, 1 }
 0x21b   : > { %351 = sbr.rel (%p588_p4) target bundleno = 709 (0x2c5), region = 48  ;;  %699 = vset.pattern.permute.xlu0 (!%p588_p4), %v836_v54  ;;  %v371_v56 = vunpack.c.l.s4 (!%p588_p4), %v837_v55  ;;  %v838_v61 = vmov (!%p588_p4), 1966171168   ;;  %v353_v0 = vunpack.c.0.s8 (!%p588_p4), %v352_v60  ;;  %s359_s13 = sand.u32 (!%p588_p4), 1, %s812_s12  ;;  %v839_v15 = vmov (!%p588_p4), 0.0  }
 0x21c   : > { %v374_v59 = vshrl.u32 (!%p588_p4), %v373_v57, 7  ;;  %v394_v62 = vunpack.c.l.s4 (!%p588_p4), %v838_v61  ;;  %s601_s4 = sshll.u32 (!%p588_p4), %s356_s3, 2  ;;  %v436_v27 = vld [vmem:[#allocation4] sm:$0x3] (!%p588_p4)  ;;  %vm440_vm13 = vcmp.lt.s32.totalorder (!%p588_p4), %v373_v57, 256 }
 0x21d   : > { %v372_v58 = vunpack.c.0.s8 (!%p588_p4), %v371_v56  ;;  %vm369_vm10 = vcmp.eq.s32.totalorder (!%p588_p4), %v353_v0, 1  ;;  %s362_s7 = sadd.s32 (!%p588_p4), %s601_s4, %s359_s13  ;;  %vm382_vm11 = vcmp.eq.s32.totalorder (!%p588_p4), %v353_v0, 2  ;;  %vm387_vm12 = vcmp.eq.s32.totalorder (!%p588_p4), %v353_v0, 3 }
 0x21e   : > { %v395_v1 = vunpack.c.0.s8 (!%p588_p4), %v394_v62  ;;  %s363_s22 = scalar_lea.vmem (!%p588_p4), [#allocation5], %s362_s7  ;;  %v594_v16 = vsel (!%p588_p4), %vm369_vm10, 1.0, %v839_v15 }
 0x21f   : > { %v354_v53 = vld [vmem:[#allocation2] sm:$0xf] (!%p588_p4)  ;;  %v375_v63 = vsub.s32 (!%p588_p4), %v372_v58, %v374_v59  ;;  %v413_v18 = vmul.f32 (!%p588_p4), 0.5, %v594_v16 }
 0x220   : > { %367 = vperm.xlu0 (!%p588_p4), %699, %v354_v53   ;;  %v398_v6 = vsub.s32 (!%p588_p4), %v395_v1, %v374_v59  ;;  %v364_v12 = vld [vmem:[%s363_s22] ss:$2 sm:$0x3] (!%p588_p4) }
 0x221   : > { %v414_v19 = vadd.f32 (!%p588_p4), 0.25, %v413_v18 }
 0x223   : > { %v422_v20 = vrot.slane %v414_v19, %v398_v6 }
 0x225   : > { %v429_v22 = vrot.slane %v422_v20, %v398_v6 }
 0x29f   : > { %v368_v2 = vpop.permute.xlu0 %367 }
 0x2a0   : > { %v376_v3 = vrot.slane %v368_v2, %v375_v63 }
 0x2a2   : > { %v591_v4 = vrot.slane %v376_v3, 9  ;;  %v592_v5 = vrot.slane %v376_v3, 10  ;;  %v593_v8 = vrot.slane %v376_v3, 11 }
 0x2a4   : > { %v381_v7 = vsel %vm369_vm10, %v591_v4, %v376_v3 }
 0x2a5   : > { %v386_v9 = vsel %vm382_vm11, %v592_v5, %v381_v7 }
 0x2a6   : > { %v391_v10 = vsel %vm387_vm12, %v593_v8, %v386_v9 }
 0x2a7   : > { %v399_v11 = vrot.slane %v391_v10, %v398_v6 }
 0x2a9   : > { %v406_v13 = vrot.slane %v399_v11, %v398_v6 }
 0x2ab   : > { %v408_v14 = vsub.f32 %v364_v12, %v406_v13 }
 0x2ad   : > { %v409_v17 = vmul.f32 1.442695, %v408_v14  ;;  %v431_v25 = vmul.f32 %v429_v22, %v408_v14 }
 0x2af   : > { %700 = vpow2.f32 %v409_v17 }
 0x2b9   : > { %v701_v21 = vpop.eup %700 }
 0x2ba   : > { %v432_v23 = vsub.f32 1.0, %v701_v21 }
 0x2bc   : > { %v433_v24 = vmul.f32 %v432_v23, %v432_v23 }
 0x2be   : > { %v434_v26 = vsub.f32 0.0, %v433_v24 }
 0x2c0   : > { %v435_v28 = vmul.f32 %v434_v26, %v431_v25 }
 0x2c2   : > { %v437_v29 = vadd.f32 %v436_v27, %v435_v28 }
 0x2c4   : > { %442 = vst.msk [vmem:[#allocation4] sm:$0x3] %vm440_vm13, %v437_v29 }
 0x2c5 PF: > { %444 = sbr.rel (%p993_p7) target bundleno = 929 (0x3a1), region = 52  ;;  %v447_v30 = vlaneseq (!%p993_p7)  ;;  %vm457_vm14 = vcmask (!%p993_p7), 1040384   ;;  %vm472_vm15 = vcmask (!%p993_p7), 0  }
 0x2c7   : > { %v448_v31 = vshrl.u32 (!%p993_p7), %v447_v30, 7 }
 0x2c9   : > { %v449_v33 = vsub.s32 (!%p993_p7), 0, %v448_v31  ;;  %v453_v34 = vsub.s32 (!%p993_p7), 1, %v448_v31 }
 0x2cb   : > { %v445_v32 = vld [vmem:[#allocation4] sm:$0x3] (!%p993_p7) }
 0x2cc   : > { %v450_v35 = vrot.slane %v445_v32, %v449_v33  ;;  %v454_v36 = vrot.slane %v445_v32, %v453_v34 }
 0x2ce   : > { %v458_v37 = vsel %vm457_vm14, %v450_v35, 0.0  ;;  %v459_v38 = vsel %vm457_vm14, %v454_v36, 0.0 }
 0x2cf   : > { %v460_v39 = vadd.f32 %v459_v38, %v458_v37 }
 0x2d1   : > { %461 = vadd.xlane.f32.xlu0 %v460_v39 }
 0x35e   : > { %v462_v40 = vpop.xlane.xlu0 %461 }
 0x35f   : > { %v463_v41 = vrot.slane %v462_v40, 4 }
 0x361   : > { %v464_v42 = vadd.f32 %v463_v41, %v462_v40 }
 0x363   : > { %v465_v43 = vrot.slane %v464_v42, 2 }
 0x365   : > { %v466_v44 = vadd.f32 %v465_v43, %v464_v42 }
 0x367   : > { %v467_v45 = vrot.slane %v466_v44, 1 }
 0x369   : > { %v468_v46 = vadd.f32 %v467_v45, %v466_v44 }
 0x36b   : > { %602 = vpush %v468_v46 }
 0x39c   : > { %s603_s12 = spop %602 }
 0x39d   : > { %v470_v47 = vstv %s603_s12 }
 0x39e   : > { %v471_v48 = vmul.f32 0.001953125, %v470_v47 }
 0x3a0   : > { %473 = vst.msk [vmem:[#allocation9] sm:$0x1] %vm472_vm15, %v471_v48 }
 0x3a1 PF: > { %p1019_p5 = scmp.eq.s32.totalorder %s570_s17, 3  ;;  %s840_s5 = smov [#allocation9]  }
 0x3a2   : > { %s481_s8 = sshll.u32 %s840_s5, 4  ;;  %s482_s8 = int_to_ptr.vmem [resolvable:$true] %s481_s8 }
 0x3a3   : > { %s732_s9 = scalar_lea.vmem %s482_s8, 16  ;;  %s738_s24 = scalar_lea.vmem %s482_s8, 32 }
 0x3a4   : > { %p733_p2 = scmp.ne.s32.totalorder %s482_s8, %s732_s9  ;;  %p739_p10 = scmp.lt.s32.totalorder %s482_s8, %s482_s8 }
 0x3a5   : > { %p740_p11 = scmp.lt.s32.totalorder %s738_s24, %s732_s9 }
 0x3a6   : > { %p734_p6 = pnand %p733_p2, %p1019_p5 }
 0x3a7   : > { %p741_p12 = por %p740_p11, %p739_p10 }
 0x3a8   : > { %p735_p0 = pneg %p734_p6 }
 0x3aa   : > { %p742_p8 = pnand %p741_p12, %p735_p0 }
 0x3ac   : > { %745 = shalt.err (!%p742_p8)
}
 0x3ad   : > { %s746_s23 = scalar_lea.hbm %s1071_s2, 16 }
 0x3ae   : > { %p747_p9 = scmp.ne.s32.totalorder %s1071_s2, %s746_s23  ;;  %p752_p7 = scmp.lt.u32.totalorder %s746_s23, %s1071_s2 }
 0x3b0   : > { %p748_p13 = pnand %p747_p9, %p1019_p5 }
 0x3b2   : > { %p749_p1 = pneg %p748_p13 }
 0x3b4   : > { %p754_p3 = pnand %p752_p7, %p749_p1 }
 0x3b6   : > { %757 = shalt.err (!%p754_p3)
}
 0x3b7   : > { %607 = dma.vmem_to_hbm [thread:$0]  (%p1019_p5), %s482_s8, 16, %s1071_s2, [#allocation8]  }
 0x3b8   : > { %795 = dma.done.wait (%p1019_p5), [#allocation8], 16  }
 0x3b9   : > { %797 = vsyncadd (%p1019_p5), [#allocation8], 4294967280 }
 0x3ba PF: > { %s16_s16 = sadd.s32 1, %s828_s16   ;;  %s1080_s9 = smov %s804_s10 }
 0x3bb   : > { %p13_p4 = scmp.ge.s32.totalorder %s16_s16, 6   ;;  %s1081_s10 = smov %s808_s11 }
 0x3bc   : > { %s1082_s11 = smov %s929_s6  ;;  %s1083_s12 = smov %s820_s14 }
 0x3bd   : > { %s1084_s13 = smov %s824_s15  ;;  %s1085_s14 = smov %s1088_s18 }
 0x3be   : > { %s1086_s15 = smov %s1092_s19  ;;  %15 = sbr.rel (!%p13_p4) target bundleno = 6 (0x6), region = 90 }
 0x3c5   :  { %494 = vsyncpa [#allocation7], 1 }
 0x3c6   :  { %496 = vsyncpa [#allocation7 + $0x1], 1 }
 0x3c7   :  { %497 = vsyncpa [#allocation8], 1 }
 0x3c8   :  { %499 = vsyncpa [#allocation8 + $0x1], 1 }

</bundles_post_ra>
